<compile_context>
chip_gen: v7x
topology: tpu7x:2x2x1
jax: 0.10.0
libtpu: 0.0.40
codegen_flags: <defaults>
</compile_context>

<pallas_src>
import functools

import jax
import jax.numpy as jnp
from jax.experimental import pallas as pl
from jax.experimental.pallas import tpu as pltpu


_SUBLANE = 8                           # f32 sublane quantum
_PER_BUFFER_BYTES = 4 * 1024 * 1024    # per-input, per-buffer VMEM budget
_MAX_TILE_ROWS = 8192                  # generous cap; byte budget is the real limit
_VMEM_LIMIT_BYTES = 32 * 1024 * 1024   # 2 inputs x 2 buffers x 4 MiB + headroom


def _sc_partial_kernel(x_ref, y_ref, num_ref, den_ref, *, rows, tile_rows, rem):
    """(tile_rows, F) input block -> (1, 1, F) lane-dense partial L1 sums."""
    x = x_ref[...].astype(jnp.float32)
    y = y_ref[...].astype(jnp.float32)
    diff = jnp.abs(y - x)
    absy = jnp.abs(y)

    if rem:  # static Python branch: only emitted when rows % tile_rows != 0
        # The final block reads past the end of the array; those rows hold
        # unspecified data and must be zeroed.  `limit >= tile_rows` for all
        # non-final blocks, so the select is a no-op there.
        i = pl.program_id(0)
        limit = rows - i * tile_rows
        row_ids = jax.lax.broadcasted_iota(jnp.int32, diff.shape, 0)
        valid = row_ids < limit
        diff = jnp.where(valid, diff, 0.0)
        absy = jnp.where(valid, absy, 0.0)

    f = diff.shape[1]
    # Sublane-only reduce per block; the single cross-lane reduce + divide is
    # deferred to the tiny JAX-side epilogue.
    num_ref[...] = jnp.sum(diff, axis=0, keepdims=True).reshape(1, 1, f)
    den_ref[...] = jnp.sum(absy, axis=0, keepdims=True).reshape(1, 1, f)


def spectral_convergence_loss(x_mag: jax.Array, y_mag: jax.Array,
                              *, tile_rows: int | None = None) -> jax.Array:
    """Pallas implementation of SpectralConvergenceLoss.forward.

    Args:
        x_mag: (B, #frames, #freq_bins) predicted magnitude spectrogram.
        y_mag: (B, #frames, #freq_bins) ground-truth magnitude spectrogram.
            bf16 inputs are encouraged for bandwidth-bound callers; the kernel
            accumulates in f32 either way.
        tile_rows: optional row-tile override (testing / tuning).
    Returns:
        scalar float32 loss.
    """
    assert x_mag.shape == y_mag.shape, (x_mag.shape, y_mag.shape)
    F = x_mag.shape[-1]
    rows = 1
    for d in x_mag.shape[:-1]:
        rows *= d
    rows = max(rows, 1)

    # Free collapse of leading dims; dtype passes through untouched.
    x2 = x_mag.reshape(rows, F)
    y2 = y_mag.reshape(rows, F)

    # Row tile: largest block inside the per-buffer VMEM byte budget.
    if tile_rows is None:
        itemsize = max(x2.dtype.itemsize, y2.dtype.itemsize)
        tile_rows = max(_SUBLANE, _PER_BUFFER_BYTES // (F * itemsize))
        tile_rows = min(tile_rows, _MAX_TILE_ROWS)
    if tile_rows >= rows:
        tile_rows = rows                       # single block; full dim is exempt
    else:
        tile_rows = max(_SUBLANE, (tile_rows // _SUBLANE) * _SUBLANE)

    num_blocks = pl.cdiv(rows, tile_rows)
    rem = rows % tile_rows

    kernel = functools.partial(_sc_partial_kernel, rows=rows,
                               tile_rows=tile_rows, rem=rem)

    bytes_in = rows * F * (x2.dtype.itemsize + y2.dtype.itemsize)
    bytes_out = 2 * num_blocks * F * 4
    cost = pl.CostEstimate(flops=5 * rows * F, transcendentals=0,
                           bytes_accessed=bytes_in + bytes_out)

    num_p, den_p = pl.pallas_call(
        kernel,
        out_shape=(
            jax.ShapeDtypeStruct((num_blocks, 1, F), jnp.float32),
            jax.ShapeDtypeStruct((num_blocks, 1, F), jnp.float32),
        ),
        grid=(num_blocks,),
        in_specs=[
            pl.BlockSpec((tile_rows, F), lambda i: (i, 0)),
            pl.BlockSpec((tile_rows, F), lambda i: (i, 0)),
        ],
        out_specs=(
            pl.BlockSpec((1, 1, F), lambda i: (i, 0, 0)),
            pl.BlockSpec((1, 1, F), lambda i: (i, 0, 0)),
        ),
        compiler_params=pltpu.CompilerParams(
            dimension_semantics=("parallel",),   # independent per-block partials
            vmem_limit_bytes=_VMEM_LIMIT_BYTES,
        ),
        cost_estimate=cost,
    )(x2, y2)

    # Tiny epilogue: one cross-lane reduce of the partials + divide.
    return jnp.sum(num_p) / jnp.sum(den_p)


if __name__ == "__main__":
    key = jax.random.PRNGKey(0)
    kx, ky = jax.random.split(key)

    # (B, #frames, #freq_bins); odd freq count (129) exercises the unpadded,
    # non-128-multiple lane path; the forced-small tile below exercises the
    # ragged final block masking.
    B, T, F = 2, 30, 129
    x_mag = jnp.abs(jax.random.normal(kx, (B, T, F), dtype=jnp.float32))
    y_mag = jnp.abs(jax.random.normal(ky, (B, T, F), dtype=jnp.float32))

    ref = jnp.sum(jnp.abs(y_mag - x_mag)) / jnp.sum(jnp.abs(y_mag))

    # Default path: auto tile (single full-rows block at this size).
    loss = jax.block_until_ready(spectral_convergence_loss(x_mag, y_mag))
    assert jnp.allclose(loss, ref, rtol=1e-5, atol=1e-6), (loss, ref)

    # Forced small tile: multi-block grid + ragged final block (60 % 16 != 0),
    # i.e. the in-kernel masking and per-block partial-output path.
    loss_multi = jax.block_until_ready(
        spectral_convergence_loss(x_mag, y_mag, tile_rows=16))
    assert jnp.allclose(loss_multi, ref, rtol=1e-5, atol=1e-6), (loss_multi, ref)

    # bf16 passthrough (halves HBM bytes; f32 accumulation in-kernel).
    loss_bf16 = jax.block_until_ready(
        spectral_convergence_loss(x_mag.astype(jnp.bfloat16),
                                  y_mag.astype(jnp.bfloat16)))
    assert jnp.allclose(loss_bf16, ref, rtol=2e-2), (loss_bf16, ref)

    print("KERNEL_OK")
</pallas_src>

<mosaic_0001>
module attributes {stable_mosaic.version = 11 : i64} {
  func.func @_sc_partial_kernel(%arg0: i32, %arg1: memref<60x129xf32, #tpu.memory_space<vmem>>, %arg2: memref<60x129xf32, #tpu.memory_space<vmem>>, %arg3: memref<1x1x129xf32, #tpu.memory_space<vmem>>, %arg4: memref<1x1x129xf32, #tpu.memory_space<vmem>>) attributes {dimension_semantics = [#tpu.dimension_semantics<parallel>], iteration_bounds = array<i64: 1>, scalar_prefetch = 0 : i64, scratch_operands = 0 : i64, tpu.core_type = #tpu.core_type<tc>, window_params = [{transform_indices = @transform_0, window_bounds = array<i64: 60, 129>}, {transform_indices = @transform_1, window_bounds = array<i64: 60, 129>}, {transform_indices = @transform_2, window_bounds = array<i64: 1, 1, 129>}, {transform_indices = @transform_3, window_bounds = array<i64: 1, 1, 129>}]} {
    %c0 = arith.constant 0 : index
    %c0_0 = arith.constant 0 : index
    %0 = vector.load %arg1[%c0, %c0_0] : memref<60x129xf32, #tpu.memory_space<vmem>>, vector<60x129xf32>
    %c0_1 = arith.constant 0 : index
    %c0_2 = arith.constant 0 : index
    %1 = vector.load %arg2[%c0_1, %c0_2] : memref<60x129xf32, #tpu.memory_space<vmem>>, vector<60x129xf32>
    %2 = arith.subf %1, %0 : vector<60x129xf32>
    %3 = math.absf %2 : vector<60x129xf32>
    %4 = math.absf %1 : vector<60x129xf32>
    %cst = arith.constant dense<0.000000e+00> : vector<129xf32>
    %5 = vector.multi_reduction <add>, %3, %cst [0] : vector<60x129xf32> to vector<129xf32>
    %6 = vector.shape_cast %5 : vector<129xf32> to vector<1x129xf32>
    %7 = vector.shape_cast %6 : vector<1x129xf32> to vector<1x1x129xf32>
    %c0_3 = arith.constant 0 : index
    %c0_4 = arith.constant 0 : index
    %c0_5 = arith.constant 0 : index
    %8 = vector.load %arg3[%c0_3, %c0_4, %c0_5] : memref<1x1x129xf32, #tpu.memory_space<vmem>>, vector<1x1x129xf32>
    tpu.vector_store %arg3[%c0_3, %c0_4, %c0_5], %7 {strides = array<i32>} : memref<1x1x129xf32, #tpu.memory_space<vmem>>, vector<1x1x129xf32>,
    %cst_6 = arith.constant dense<0.000000e+00> : vector<129xf32>
    %9 = vector.multi_reduction <add>, %4, %cst_6 [0] : vector<60x129xf32> to vector<129xf32>
    %10 = vector.shape_cast %9 : vector<129xf32> to vector<1x129xf32>
    %11 = vector.shape_cast %10 : vector<1x129xf32> to vector<1x1x129xf32>
    %c0_7 = arith.constant 0 : index
    %c0_8 = arith.constant 0 : index
    %c0_9 = arith.constant 0 : index
    %12 = vector.load %arg4[%c0_7, %c0_8, %c0_9] : memref<1x1x129xf32, #tpu.memory_space<vmem>>, vector<1x1x129xf32>
    tpu.vector_store %arg4[%c0_7, %c0_8, %c0_9], %11 {strides = array<i32>} : memref<1x1x129xf32, #tpu.memory_space<vmem>>, vector<1x1x129xf32>,
    return
  }
  func.func @transform_0(%arg0: i32) -> (i32, i32) {
    %c0_i32 = arith.constant 0 : i32
    %c0_i32_0 = arith.constant 0 : i32
    return %arg0, %c0_i32 : i32, i32
  }
  func.func @transform_1(%arg0: i32) -> (i32, i32) {
    %c0_i32 = arith.constant 0 : i32
    %c0_i32_0 = arith.constant 0 : i32
    return %arg0, %c0_i32 : i32, i32
  }
  func.func @transform_2(%arg0: i32) -> (i32, i32, i32) {
    %c0_i32 = arith.constant 0 : i32
    %c0_i32_0 = arith.constant 0 : i32
    %c0_i32_1 = arith.constant 0 : i32
    return %arg0, %c0_i32, %c0_i32_0 : i32, i32, i32
  }
  func.func @transform_3(%arg0: i32) -> (i32, i32, i32) {
    %c0_i32 = arith.constant 0 : i32
    %c0_i32_0 = arith.constant 0 : i32
    %c0_i32_1 = arith.constant 0 : i32
    return %arg0, %c0_i32, %c0_i32_0 : i32, i32, i32
  }
}

</mosaic_0001>

<bundles_post_ra>
// kernel: tpu_custom_call.1
= control target key start
LH: loop header
LB: loop body
LE: loop exit
PB: predicated region body
PF: predicated region fallthrough
CT: control target
= control target key end

     0   :  { %9 = vsyncpa [#allocation3], 0  ;;  %s536_s0 = inlined_call_operand.hbm [shape: f32[60,129], index: 0, kind: input, shape index: {}]   ;;  %s537_s1 = inlined_call_operand.hbm [shape: f32[60,129], index: 1, kind: input, shape index: {}]   ;;  %s538_s2 = inlined_call_operand.hbm [shape: f32[1,1,129], index: 2, kind: output, shape index: {0}]   ;;  %s539_s3 = inlined_call_operand.hbm [shape: f32[1,1,129], index: 3, kind: output, shape index: {1}]  }
   0x1   :  { %10 = vsyncpa [#allocation6], 0 }
   0x2   :  { %11 = vsyncpa [#allocation4], 0 }
   0x3   :  { %12 = vsyncpa [#allocation9], 0  ;;  %s371_s12 = smov [#allocation2]   ;;  %s275_s16 = scalar_lea.hbm %s536_s0, 2048 }
   0x4   :  { %s18_s13 = sshll.u32 %s371_s12, 4  ;;  %p276_p0 = scmp.ne.s32.totalorder %s536_s0, %s275_s16  ;;  %s19_s13 = int_to_ptr.vmem [resolvable:$true] %s18_s13 }
   0x5   :  { %p279_p1 = scmp.lt.u32.totalorder %s275_s16, %s536_s0 }
   0x7   :  { %p281_p2 = pnand %p279_p1, %p276_p0 }
   0x9   :  { %284 = shalt.err (!%p281_p2)
}
   0xa   :  { %s285_s21 = scalar_lea.vmem %s19_s13, 2048  ;;  %p290_p4 = scmp.lt.s32.totalorder %s19_s13, %s19_s13 }
   0xb   :  { %p286_p3 = scmp.ne.s32.totalorder %s19_s13, %s285_s21  ;;  %p291_p5 = scmp.lt.s32.totalorder %s285_s21, %s285_s21 }
   0xd   :  { %p292_p6 = por %p291_p5, %p290_p4 }
   0xf   :  { %p293_p7 = pnand %p292_p6, %p286_p3 }
  0x11   :  { %296 = shalt.err (!%p293_p7)
}
  0x12   :  { %s372_s22 = smov 256   ;;  %s373_s23 = smov 16  }
  0x13   :  { %24 = dma.hbm_to_vmem [thread:$0]  %s536_s0, 2048, %s19_s13, [#allocation3], %s372_s22, %s372_s22, %s373_s23  }
  0x14   :  { %s374_s26 = smov [#allocation5]   ;;  %s297_s30 = scalar_lea.hbm %s537_s1, 2048 }
  0x15   :  { %s30_s27 = sshll.u32 %s374_s26, 4  ;;  %p298_p8 = scmp.ne.s32.totalorder %s537_s1, %s297_s30  ;;  %s31_s27 = int_to_ptr.vmem [resolvable:$true] %s30_s27 }
  0x16   :  { %p301_p9 = scmp.lt.u32.totalorder %s297_s30, %s537_s1 }
  0x18   :  { %p303_p10 = pnand %p301_p9, %p298_p8 }
  0x1a   :  { %306 = shalt.err (!%p303_p10)
}
  0x1b   :  { %s307_s8 = scalar_lea.vmem %s31_s27, 2048  ;;  %p312_p12 = scmp.lt.s32.totalorder %s31_s27, %s31_s27 }
  0x1c   :  { %p308_p11 = scmp.ne.s32.totalorder %s31_s27, %s307_s8  ;;  %p313_p13 = scmp.lt.s32.totalorder %s307_s8, %s307_s8 }
  0x1e   :  { %p314_p0 = por %p313_p13, %p312_p12 }
  0x20   :  { %p315_p1 = pnand %p314_p0, %p308_p11 }
  0x22   :  { %318 = shalt.err (!%p315_p1)
}
  0x23   :  { %36 = dma.hbm_to_vmem [thread:$0]  %s537_s1, 2048, %s31_s27, [#allocation6], %s372_s22, %s372_s22, %s373_s23  }
  0x24   :  { %363 = dma.done.wait [#allocation3], 2048  }
  0x25   :  { %364 = vsyncadd [#allocation3], 4294965248 }
  0x26   :  { %365 = dma.done.wait [#allocation6], 2048  }
  0x27   :  { %366 = vsyncadd [#allocation6], 4294965248  ;;  %v43_v0 = vld [vmem:[#allocation2] sm:$0xff]  ;;  %v44_v1 = vld [vmem:[#allocation2 + $0x8] sm:$0xff]  ;;  %vm129_vm0 = vcmask 1043456   ;;  %vm138_vm1 = vcmask 7168  }
  0x28   :  { %v45_v2 = vld [vmem:[#allocation2 + $0x10] sm:$0xff]  ;;  %v46_v3 = vld [vmem:[#allocation2 + $0x18] sm:$0xff]  ;;  %v47_v4 = vld [vmem:[#allocation2 + $0x20] sm:$0xff]  ;;  %vm152_vm2 = vcmask 3072   ;;  %s376_s1 = smov [#allocation7]  }
  0x29   :  { %v48_v5 = vld [vmem:[#allocation2 + $0x28] sm:$0xff]  ;;  %v49_v6 = vld [vmem:[#allocation2 + $0x30] sm:$0xff]  ;;  %v50_v7 = vld [vmem:[#allocation2 + $0x38] sm:$0xff]  ;;  %s244_s10 = sshll.u32 %s376_s1, 4  ;;  %s245_s10 = int_to_ptr.vmem [resolvable:$true] %s244_s10 }
  0x2a   :  { %v51_v8 = vld [vmem:[#allocation2 + $0x40] sm:$0xff]  ;;  %v52_v9 = vld [vmem:[#allocation2 + $0x48] sm:$0xff]  ;;  %v53_v12 = vld [vmem:[#allocation2 + $0x50] sm:$0xff]  ;;  %s319_s11 = scalar_lea.vmem %s245_s10, 32  ;;  %p324_p3 = scmp.lt.s32.totalorder %s245_s10, %s245_s10 }
  0x2b   :  { %v422_v10 = vld [vmem:[#allocation5] sm:$0xff]  ;;  %v424_v11 = vld [vmem:[#allocation5 + $0x8] sm:$0xff]  ;;  %v57_v13 = vld [vmem:[#allocation2 + $0x70] sm:$0xf]  ;;  %p320_p2 = scmp.ne.s32.totalorder %s245_s10, %s319_s11  ;;  %p325_p4 = scmp.lt.s32.totalorder %s319_s11, %s319_s11 }
  0x2c   :  { %v426_v14 = vld [vmem:[#allocation5 + $0x10] sm:$0xff]  ;;  %v428_v15 = vld [vmem:[#allocation5 + $0x18] sm:$0xff]  ;;  %v430_v16 = vld [vmem:[#allocation5 + $0x20] sm:$0xff]  ;;  %v75_v17 = vsub.f32 %v422_v10, %v43_v0  ;;  %v76_v18 = vsub.f32 %v424_v11, %v44_v1  ;;  %v107_v56 = vand.u32 2147483647, %v422_v10 }
  0x2d   :  { %v54_v19 = vld [vmem:[#allocation2 + $0x58] sm:$0xff]  ;;  %v434_v20 = vld [vmem:[#allocation5 + $0x28] sm:$0xff]  ;;  %v436_v21 = vld [vmem:[#allocation5 + $0x30] sm:$0xff]  ;;  %v77_v23 = vsub.f32 %v426_v14, %v45_v2  ;;  %v78_v24 = vsub.f32 %v428_v15, %v46_v3  ;;  %v79_v25 = vsub.f32 %v430_v16, %v47_v4  ;;  %p326_p5 = por %p325_p4, %p324_p3 }
  0x2e   :  { %v438_v22 = vld [vmem:[#allocation5 + $0x38] sm:$0xff]  ;;  %v55_v26 = vld [vmem:[#allocation2 + $0x60] sm:$0xff]  ;;  %v56_v27 = vld [vmem:[#allocation2 + $0x68] sm:$0xff]  ;;  %v80_v31 = vsub.f32 %v434_v20, %v48_v5  ;;  %v81_v32 = vsub.f32 %v436_v21, %v49_v6  ;;  %v91_v33 = vand.u32 2147483647, %v75_v17 }
  0x2f   :  { %v443_v28 = vld [vmem:[#allocation5 + $0x40] sm:$0xff]  ;;  %v445_v29 = vld [vmem:[#allocation5 + $0x48] sm:$0xff]  ;;  %v447_v30 = vld [vmem:[#allocation5 + $0x50] sm:$0xff]  ;;  %v82_v38 = vsub.f32 %v438_v22, %v50_v7  ;;  %v92_v42 = vand.u32 2147483647, %v76_v18  ;;  %p327_p6 = pnand %p326_p5, %p320_p2 }
  0x30   :  { %v58_v34 = vld [vmem:[#allocation2 + $0x78] sm:$0xf]  ;;  %v453_v36 = vld [vmem:[#allocation5 + $0x60] sm:$0xff]  ;;  %v455_v37 = vld [vmem:[#allocation5 + $0x68] sm:$0xff]  ;;  %v83_v40 = vsub.f32 %v443_v28, %v51_v8  ;;  %v84_v41 = vsub.f32 %v445_v29, %v52_v9  ;;  %v93_v43 = vand.u32 2147483647, %v77_v23  ;;  %v85_v45 = vsub.f32 %v447_v30, %v53_v12 }
  0x31   :  { %v451_v35 = vld [vmem:[#allocation5 + $0x58] sm:$0xff]  ;;  %v458_v39 = vld [vmem:[#allocation5 + $0x70] sm:$0xf]  ;;  %v94_v47 = vand.u32 2147483647, %v78_v24  ;;  %v87_v53 = vsub.f32 %v453_v36, %v55_v26  ;;  %v88_v54 = vsub.f32 %v455_v37, %v56_v27  ;;  %v139_v63 = vsel %vm138_vm1, %v92_v42, 0.0 }
  0x32   :  { %v462_v44 = vld [vmem:[#allocation5 + $0x78] sm:$0xf]  ;;  %v89_v46 = vsub.f32 %v458_v39, %v57_v13  ;;  %v95_v48 = vand.u32 2147483647, %v79_v25  ;;  %v86_v49 = vsub.f32 %v451_v35, %v54_v19  ;;  %v96_v50 = vand.u32 2147483647, %v80_v31 }
  0x33   :  { %v97_v51 = vand.u32 2147483647, %v81_v32  ;;  %v123_v52 = vadd.f32 %v93_v43, %v91_v33  ;;  %v98_v55 = vand.u32 2147483647, %v82_v38  ;;  %v90_v57 = vsub.f32 %v462_v44, %v58_v34 }
  0x34   :  { %v99_v58 = vand.u32 2147483647, %v83_v40  ;;  %v100_v59 = vand.u32 2147483647, %v84_v41  ;;  %v101_v61 = vand.u32 2147483647, %v85_v45 }
  0x35   :  { %v124_v60 = vadd.f32 %v123_v52, %v95_v48  ;;  %v105_v62 = vand.u32 2147483647, %v89_v46  ;;  %v140_v0 = vsel %vm138_vm1, %v94_v47, 0.0  ;;  %v102_v1 = vand.u32 2147483647, %v86_v49 }
  0x36   :  { %v141_v3 = vadd.f32 %v140_v0, %v139_v63  ;;  %v142_v4 = vsel %vm138_vm1, %v96_v50, 0.0  ;;  %v103_v5 = vand.u32 2147483647, %v87_v53  ;;  %v104_v6 = vand.u32 2147483647, %v88_v54 }
  0x37   :  { %v125_v2 = vadd.f32 %v124_v60, %v97_v51  ;;  %v144_v7 = vsel %vm138_vm1, %v98_v55, 0.0  ;;  %v106_v8 = vand.u32 2147483647, %v90_v57  ;;  %v109_v12 = vand.u32 2147483647, %v426_v14 }
  0x38   :  { %v143_v10 = vadd.f32 %v142_v4, %v141_v3  ;;  %v130_v13 = vsel %vm129_vm0, %v105_v62, 0.0  ;;  %v146_v17 = vsel %vm138_vm1, %v100_v59, 0.0  ;;  %v108_v18 = vand.u32 2147483647, %v424_v11 }
  0x39   :  { %v126_v9 = vadd.f32 %v125_v2, %v99_v58  ;;  %v111_v19 = vand.u32 2147483647, %v430_v16  ;;  %v148_v25 = vsel %vm138_vm1, %v102_v1, 0.0  ;;  %v110_v26 = vand.u32 2147483647, %v428_v15 }
  0x3a   :  { %v145_v24 = vadd.f32 %v144_v7, %v143_v10  ;;  %v150_v27 = vsel %vm138_vm1, %v104_v6, 0.0  ;;  %v112_v31 = vand.u32 2147483647, %v434_v20  ;;  %v113_v14 = vand.u32 2147483647, %v436_v21 }
  0x3b   :  { %v127_v23 = vadd.f32 %v126_v9, %v101_v61  ;;  %v184_v32 = vadd.f32 %v109_v12, %v107_v56  ;;  %v153_v38 = vsel %vm152_vm2, %v106_v8, 0.0  ;;  %v114_v11 = vand.u32 2147483647, %v438_v22 }
  0x3c   :  { %v147_v34 = vadd.f32 %v146_v17, %v145_v24  ;;  %v115_v16 = vand.u32 2147483647, %v443_v28  ;;  %v116_v40 = vand.u32 2147483647, %v445_v29  ;;  %v117_v41 = vand.u32 2147483647, %v447_v30 }
  0x3d   :  { %v128_v33 = vadd.f32 %v127_v23, %v103_v5  ;;  %v185_v15 = vadd.f32 %v184_v32, %v111_v19  ;;  %v198_v20 = vsel %vm138_vm1, %v108_v18, 0.0  ;;  %v199_v21 = vsel %vm138_vm1, %v110_v26, 0.0 }
  0x3e   :  { %v149_v43 = vadd.f32 %v148_v25, %v147_v34  ;;  %v118_v45 = vand.u32 2147483647, %v451_v35  ;;  %v200_v47 = vadd.f32 %v199_v21, %v198_v20  ;;  %v201_v48 = vsel %vm138_vm1, %v112_v31, 0.0 }
  0x3f   :  { %v131_v42 = vadd.f32 %v130_v13, %v128_v33  ;;  %v186_v46 = vadd.f32 %v185_v15, %v113_v14  ;;  %v121_v28 = vand.u32 2147483647, %v458_v39  ;;  %v203_v29 = vsel %vm138_vm1, %v114_v11, 0.0 }
  0x40   :  { %v151_v49 = vadd.f32 %v150_v27, %v149_v43  ;;  %v119_v30 = vand.u32 2147483647, %v453_v36  ;;  %v202_v51 = vadd.f32 %v201_v48, %v200_v47  ;;  %v120_v54 = vand.u32 2147483647, %v455_v37 }
  0x41   :  { %v132_v22 = vrot.slane %v131_v42, 4  ;;  %v187_v50 = vadd.f32 %v186_v46, %v115_v16  ;;  %v205_v35 = vsel %vm138_vm1, %v116_v40, 0.0  ;;  %v122_v55 = vand.u32 2147483647, %v462_v44 }
  0x42   :  { %v154_v53 = vadd.f32 %v153_v38, %v151_v49  ;;  %v204_v57 = vadd.f32 %v203_v29, %v202_v51  ;;  %v190_v39 = vsel %vm129_vm0, %v121_v28, 0.0  ;;  %v207_v60 = vsel %vm138_vm1, %v118_v45, 0.0 }
  0x43   :  { %v133_v52 = vadd.f32 %v132_v22, %v131_v42  ;;  %v188_v56 = vadd.f32 %v187_v50, %v117_v41  ;;  %v167_v61 = vlaneseq  ;;  %v375_v1 = vmov 1966171168  }
  0x44   :  { %v155_v59 = vrot.slane %v154_v53, 4  ;;  %v206_v62 = vadd.f32 %v205_v35, %v204_v57  ;;  %v165_v2 = vunpack.c.l.s4 %v375_v1  ;;  %v209_v37 = vsel %vm138_vm1, %v120_v54, 0.0 }
  0x45   :  { %v134_v58 = vrot.slane %v133_v52, 2  ;;  %v189_v36 = vadd.f32 %v188_v56, %v119_v30  ;;  %v211_v6 = vsel %vm152_vm2, %v122_v55, 0.0  ;;  %v168_v12 = vshrl.u32 %v167_v61, 7 }
  0x46   :  { %v156_v0 = vadd.f32 %v155_v59, %v154_v53  ;;  %v208_v4 = vadd.f32 %v207_v60, %v206_v62  ;;  %v166_v10 = vunpack.c.0.s8 %v165_v2  ;;  %vm504_vm3 = vcmp.lt.s32.totalorder %v167_v61, 129 }
  0x47   :  { %v135_v63 = vadd.f32 %v134_v58, %v133_v52  ;;  %v191_v3 = vadd.f32 %v190_v39, %v189_v36 }
  0x48   :  { %v157_v5 = vrot.slane %v156_v0, 2  ;;  %v210_v8 = vadd.f32 %v209_v37, %v208_v4  ;;  %v169_v26 = vsub.s32 %v166_v10, %v168_v12 }
  0x49   :  { %v136_v44 = vrot.slane %v135_v63, 1  ;;  %v192_v7 = vrot.slane %v191_v3, 4 }
  0x4a   :  { %v158_v9 = vadd.f32 %v157_v5, %v156_v0  ;;  %v212_v17 = vadd.f32 %v211_v6, %v210_v8 }
  0x4b   :  { %v193_v13 = vadd.f32 %v192_v7, %v191_v3  ;;  %v137_v18 = vadd.f32 %v136_v44, %v135_v63 }
  0x4c   :  { %v159_v19 = vrot.slane %v158_v9, 1  ;;  %v213_v24 = vrot.slane %v212_v17, 4 }
  0x4d   :  { %v194_v23 = vrot.slane %v193_v13, 2 }
  0x4e   :  { %v160_v25 = vadd.f32 %v159_v19, %v158_v9  ;;  %v214_v31 = vadd.f32 %v213_v24, %v212_v17 }
  0x4f   :  { %v195_v27 = vadd.f32 %v194_v23, %v193_v13 }
  0x50   :  { %v163_v14 = vcombine.low %v137_v18, %v160_v25  ;;  %v215_v33 = vrot.slane %v214_v31, 2 }
  0x51   :  { %v196_v32 = vrot.slane %v195_v27, 1 }
  0x52   :  { %v170_v34 = vrot.slane %v163_v14, %v169_v26  ;;  %v216_v11 = vadd.f32 %v215_v33, %v214_v31 }
  0x53   :  { %v197_v40 = vadd.f32 %v196_v32, %v195_v27 }
  0x54   :  { %v177_v16 = vrot.slane %v170_v34, %v169_v26  ;;  %v217_v41 = vrot.slane %v216_v11, 1 }
  0x56   :  { %183 = vst.msk [vmem:[#allocation7] sm:$0x3] %vm504_vm3, %v177_v16  ;;  %v218_v15 = vadd.f32 %v217_v41, %v216_v11 }
  0x57   :  { %330 = shalt.err (!%p327_p6)
}
  0x58   :  { %s331_s14 = scalar_lea.hbm %s538_s2, 32 }
  0x59   :  { %p332_p7 = scmp.ne.s32.totalorder %s538_s2, %s331_s14  ;;  %p335_p8 = scmp.lt.u32.totalorder %s331_s14, %s538_s2 }
  0x5b   :  { %p337_p9 = pnand %p335_p8, %p332_p7 }
  0x5d   :  { %340 = shalt.err (!%p337_p9)
}
  0x5e   :  { %247 = dma.vmem_to_hbm [thread:$0]  %s245_s10, 32, %s538_s2, [#allocation4]   ;;  %v221_v42 = vcombine.low %v197_v40, %v218_v15 }
  0x5f   :  { %s377_s21 = smov [#allocation8]  }
  0x60   :  { %s254_s22 = sshll.u32 %s377_s21, 4  ;;  %v228_v43 = vrot.slane %v221_v42, %v169_v26  ;;  %s255_s22 = int_to_ptr.vmem [resolvable:$true] %s254_s22 }
  0x61   :  { %s341_s23 = scalar_lea.vmem %s255_s22, 32  ;;  %p346_p11 = scmp.lt.s32.totalorder %s255_s22, %s255_s22 }
  0x62   :  { %v235_v20 = vrot.slane %v228_v43, %v169_v26  ;;  %p342_p10 = scmp.ne.s32.totalorder %s255_s22, %s341_s23  ;;  %p347_p12 = scmp.lt.s32.totalorder %s341_s23, %s341_s23 }
  0x64   :  { %237 = vst.msk [vmem:[#allocation8] sm:$0x3] %vm504_vm3, %v235_v20  ;;  %p348_p13 = por %p347_p12, %p346_p11 }
  0x66   :  { %p349_p0 = pnand %p348_p13, %p342_p10 }
  0x68   :  { %352 = shalt.err (!%p349_p0)
}
  0x69   :  { %s353_s2 = scalar_lea.hbm %s539_s3, 32 }
  0x6a   :  { %p354_p1 = scmp.ne.s32.totalorder %s539_s3, %s353_s2  ;;  %p357_p2 = scmp.lt.u32.totalorder %s353_s2, %s539_s3 }
  0x6c   :  { %p359_p3 = pnand %p357_p2, %p354_p1 }
  0x6e   :  { %362 = shalt.err (!%p359_p3)
}
  0x6f   :  { %257 = dma.vmem_to_hbm [thread:$0]  %s255_s22, 32, %s539_s3, [#allocation9]  }
  0x70   :  { %367 = dma.done.wait [#allocation4], 32  }
  0x71   :  { %368 = vsyncadd [#allocation4], 4294967264 }
  0x72   :  { %369 = dma.done.wait [#allocation9], 32  }
  0x73   :  { %370 = vsyncadd [#allocation9], 4294967264 }
  0x74   :  { %264 = vsyncpa [#allocation3], 1 }
  0x75   :  { %265 = vsyncpa [#allocation6], 1 }
  0x76   :  { %266 = vsyncpa [#allocation4], 1 }
  0x77   :  { %267 = vsyncpa [#allocation9], 1 }

</bundles_post_ra>
